<compile_context>
chip_gen: v5e
topology: v5e:2x2
jax: 0.10.0
libtpu: 0.0.40
codegen_flags: <defaults>
</compile_context>

<pallas_src>
import functools

import jax
import jax.numpy as jnp
from jax import lax
from jax.experimental import pallas as pl
from jax.experimental.pallas import tpu as pltpu


# --------------------------------------------------------------------------- #
# Chip-generation helpers (perf-only; any fallback remains correct).
# --------------------------------------------------------------------------- #
def _vmem_capacity_bytes():
    try:
        return int(pltpu.get_tpu_info().vmem_capacity_bytes)
    except Exception:
        try:
            kind = jax.devices()[0].device_kind.lower()
        except Exception:
            kind = ""
        return 64 * 2**20 if ("v7" in kind or "7x" in kind) else 128 * 2**20


def _supports_bf16_elementwise():
    """v6e / v7x have bf16 VPU+EUP datapaths; v5e and earlier do not."""
    try:
        kind = jax.devices()[0].device_kind.lower()
    except Exception:
        return False
    return ("v6" in kind) or ("v7" in kind) or ("7x" in kind)


def _pick_q_tile(n, vmem_cap):
    max_t = 512
    if vmem_cap <= 64 * 2**20:          # v7x: 64 MiB physical VMEM per TC
        max_t = 128 if n >= 8192 else 256
    for t in (512, 256, 128):
        if t <= max_t and n % t == 0:
            return t
    return n                             # single full-width tile fallback


# --------------------------------------------------------------------------- #
# Kernel
# --------------------------------------------------------------------------- #
def _self_attn_kernel(gamma_ref, x_ref, w_ref, b_ref, out_ref, *rest,
                      tq, cq, mxu_dtype, exp_dtype, emit_attention):
    """One (batch, q-tile) grid step.

    Refs (channels-first, N lane-dense):
      x_ref   : (C, N)          full feature map of the current batch
      w_ref   : (2*Cq + C, C)   stacked [Wq; Wk; Wv] 1x1-conv weights
      b_ref   : (2*Cq + C, 1)   stacked biases
      out_ref : (C, TQ)         output columns of the current q-tile
      attn_ref: (TQ, N)         attention rows of the current q-tile (optional)
      q_sc    : (Cq, N), k_sc : (Cq, N), v_sc : (C, N)  per-batch projections
    """
    if emit_attention:
        attn_ref, q_sc, k_sc, v_sc = rest
    else:
        attn_ref = None
        q_sc, k_sc, v_sc = rest

    qi = pl.program_id(1)

    # --- fused Q/K/V projection: ONE long-N matmul per batch -----------------
    @pl.when(qi == 0)
    def _():
        xm = x_ref[...].astype(mxu_dtype)                                  # (C, N)
        proj = jnp.dot(w_ref[...].astype(mxu_dtype), xm,
                       preferred_element_type=jnp.float32) + b_ref[...]   # (2Cq+C, N)
        q_sc[...] = proj[:cq, :].astype(q_sc.dtype)
        k_sc[...] = proj[cq:2 * cq, :].astype(k_sc.dtype)
        v_sc[...] = proj[2 * cq:, :].astype(v_sc.dtype)

    # --- this q-tile: slice the precomputed Q projection ---------------------
    start = pl.multiple_of(qi * tq, tq)
    q_t = q_sc[:, pl.ds(start, tq)]                                        # (Cq, TQ)

    # energy[i, j] = <q[:, i], k[:, j]>  -- contract the channel dim, no .T
    energy = lax.dot_general(
        q_t, k_sc[...],
        dimension_numbers=(((0,), (0,)), ((), ())),
        preferred_element_type=jnp.float32)                                # (TQ, N)

    # --- numerically stable softmax over keys --------------------------------
    # max / row-sum / reciprocal stay f32; the exponent may run in bf16 on
    # chips with a bf16 EUP (v6e/v7x) to halve EUP pressure.
    m = jnp.max(energy, axis=-1, keepdims=True)
    if exp_dtype == jnp.float32:
        e = jnp.exp(energy - m)                                            # f32 EUP
        s = jnp.sum(e, axis=-1, keepdims=True)
    else:
        e = jnp.exp((energy - m).astype(exp_dtype))                        # bf16 EUP
        s = jnp.sum(e, axis=-1, keepdims=True, dtype=jnp.float32)
    r = pl.reciprocal(s, approx=True)          # EUP vrcp, frees VALU slots
    r = r * (2.0 - s * r)                      # one Newton step -> ~f32-exact
    if exp_dtype == jnp.float32:
        attn = e * r
    else:
        attn = e * r.astype(exp_dtype)         # stays bf16, no extra f32 cast
    if attn_ref is not None:
        attn_ref[...] = attn.astype(attn_ref.dtype)

    # out[c, i] = sum_j v[c, j] * attn[i, j]  -- contract the key (lane) dims
    out = lax.dot_general(
        v_sc[...], attn.astype(mxu_dtype),
        dimension_numbers=(((1,), (1,)), ((), ())),
        preferred_element_type=jnp.float32)                                # (C, TQ)

    gamma = gamma_ref[0]
    x_q = x_ref[:, pl.ds(start, tq)].astype(jnp.float32)                   # residual
    out_ref[...] = (gamma * out + x_q).astype(out_ref.dtype)


# --------------------------------------------------------------------------- #
# Wrapper
# --------------------------------------------------------------------------- #
def self_attn_pallas(x, gamma, wq, bq, wk, bk, wv, bv, *,
                     tq=None, mxu_dtype=jnp.bfloat16,
                     attn_dtype=None, exp_dtype=None,
                     return_attention=True):
    """SAGAN Self_Attn forward pass.

    x     : (B, C, W, H)
    gamma : (1,)
    wq/wk : (C//8, C), bq/bk : (C//8, 1)    (1x1-conv weights, channels-first)
    wv    : (C, C),    bv    : (C, 1)
    Returns (out (B,C,W,H), attention (B,N,N)), or just out if
    return_attention=False (the fast path: skips the O(N^2) HBM writeback).
    """
    B, C, W, H = x.shape
    N = W * H
    Cq = wq.shape[0]
    out_dtype = x.dtype

    vmem_cap = _vmem_capacity_bytes()
    if tq is None:
        tq = _pick_q_tile(N, vmem_cap)
    assert N % tq == 0, f"q-tile size {tq} must divide N={N}"
    n_qt = N // tq

    if attn_dtype is None:
        attn_dtype = jnp.bfloat16            # halves the N^2 writeback traffic
    if exp_dtype is None:
        # bf16 exponent only where the EUP has a bf16 path and the caller is
        # already accepting bf16 MXU precision; otherwise stay f32.
        exp_dtype = (jnp.bfloat16
                     if (mxu_dtype != jnp.float32 and _supports_bf16_elementwise())
                     else jnp.float32)

    # NCHW-native: (B, C, N) with N on the lane axis -- a free reshape.
    x_cn = x.reshape(B, C, N)
    # On small-VMEM chips (v7x) feed x in bf16 when the MXU operands are bf16:
    # halves the resident x double-buffer and the per-batch HBM read.
    if mxu_dtype != jnp.float32 and vmem_cap <= 64 * 2**20:
        x_cn = x_cn.astype(mxu_dtype)

    # Stack the three 1x1-conv projections into one matmul per batch.
    w_all = jnp.concatenate([wq, wk, wv], axis=0)     # (2*Cq + C, C)
    b_all = jnp.concatenate([bq, bk, bv], axis=0)     # (2*Cq + C, 1)
    Wrows = 2 * Cq + C

    kernel = functools.partial(_self_attn_kernel, tq=tq, cq=Cq,
                               mxu_dtype=mxu_dtype, exp_dtype=exp_dtype,
                               emit_attention=return_attention)

    out_shape = [jax.ShapeDtypeStruct((B, C, N), out_dtype)]
    out_specs = [pl.BlockSpec((None, C, tq), lambda b, qi: (b, 0, qi))]
    if return_attention:
        out_shape.append(jax.ShapeDtypeStruct((B, N, N), attn_dtype))
        out_specs.append(pl.BlockSpec((None, tq, N), lambda b, qi: (b, qi, 0)))

    grid_spec = pltpu.PrefetchScalarGridSpec(
        num_scalar_prefetch=0,
        grid=(B, n_qt),                       # batch outer, q-tiles inner
        in_specs=[
            pl.BlockSpec(memory_space=pltpu.MemorySpace.SMEM),       # gamma
            pl.BlockSpec((None, C, N), lambda b, qi: (b, 0, 0)),     # x: 1 DMA/batch
            pl.BlockSpec((Wrows, C), lambda b, qi: (0, 0)),          # stacked W
            pl.BlockSpec((Wrows, 1), lambda b, qi: (0, 0)),          # stacked b
        ],
        out_specs=out_specs,
        scratch_shapes=[
            pltpu.VMEM((Cq, N), mxu_dtype),   # q projection (per batch)
            pltpu.VMEM((Cq, N), mxu_dtype),   # k projection (per batch)
            pltpu.VMEM((C, N), mxu_dtype),    # v projection (per batch)
        ],
    )

    # Generation-aware scoped VMEM limit: ~48 MiB on 64-MiB chips (v7x),
    # ~96 MiB on 128-MiB chips (v5e/v6e).
    vmem_limit = min(100 * 2**20, int(vmem_cap * 3 // 4))

    results = pl.pallas_call(
        kernel,
        grid_spec=grid_spec,
        out_shape=tuple(out_shape),
        compiler_params=pltpu.CompilerParams(
            # Batch axis is megacore-splittable; the q-tile axis carries the
            # per-batch q/k/v scratch so it must remain "arbitrary".
            dimension_semantics=("parallel", "arbitrary"),
            vmem_limit_bytes=vmem_limit,
        ),
    )(gamma, x_cn, w_all, b_all)

    if return_attention:
        out_cn, attention = results
        return out_cn.reshape(B, C, W, H), attention
    (out_cn,) = results
    return out_cn.reshape(B, C, W, H)


# --------------------------------------------------------------------------- #
# Pure-JAX reference mirroring the PyTorch forward (NCHW, 1x1 convs).
# --------------------------------------------------------------------------- #
def self_attn_reference(x, gamma, wq, bq, wk, bk, wv, bv):
    B, C, W, H = x.shape
    N = W * H
    x_cn = x.reshape(B, C, N)                              # (B, C, N)
    q = jnp.einsum('oc,bcn->bon', wq, x_cn) + bq           # (B, Cq, N)
    k = jnp.einsum('oc,bcn->bon', wk, x_cn) + bk           # (B, Cq, N)
    v = jnp.einsum('oc,bcn->bon', wv, x_cn) + bv           # (B, C, N)
    energy = jnp.einsum('bci,bcj->bij', q, k)              # (B, N, N)
    attn = jax.nn.softmax(energy, axis=-1)
    out = jnp.einsum('bcj,bij->bci', v, attn)              # (B, C, N)
    out = gamma[0] * out + x_cn
    return out.reshape(B, C, W, H), attn


if __name__ == "__main__":
    # Small shapes consistent with the module (in_dim >= 8 so in_dim // 8 >= 1).
    # N = 256 with tq=128 exercises multiple q-tiles and the per-batch fused
    # Q/K/V projection reuse.
    B, C, W, H = 2, 16, 16, 16
    Cq = C // 8
    key = jax.random.PRNGKey(0)
    kx, kq, kk, kv, kbq, kbk, kbv = jax.random.split(key, 7)

    x = jax.random.normal(kx, (B, C, W, H), dtype=jnp.float32)

    # 1x1 conv params stored channels-first as (C_out, C_in) / (C_out, 1).
    wq = jax.random.normal(kq, (Cq, C), dtype=jnp.float32) * 0.1
    bq = jax.random.normal(kbq, (Cq, 1), dtype=jnp.float32) * 0.1
    wk = jax.random.normal(kk, (Cq, C), dtype=jnp.float32) * 0.1
    bk = jax.random.normal(kbk, (Cq, 1), dtype=jnp.float32) * 0.1
    wv = jax.random.normal(kv, (C, C), dtype=jnp.float32) * 0.1
    bv = jax.random.normal(kbv, (C, 1), dtype=jnp.float32) * 0.1
    # Module __init__ sets gamma = 0; use a nonzero value so the attention
    # path actually contributes to the checked output.
    gamma = jnp.array([0.5], dtype=jnp.float32)

    out_ref, attn_ref = self_attn_reference(x, gamma, wq, bq, wk, bk, wv, bv)

    # f32 everything (MXU operands, exp, attention output) -- tight tolerance.
    out, attention = self_attn_pallas(
        x, gamma, wq, bq, wk, bk, wv, bv,
        tq=128, mxu_dtype=jnp.float32, attn_dtype=jnp.float32,
        exp_dtype=jnp.float32)
    out = jax.block_until_ready(out)
    attention = jax.block_until_ready(attention)
    assert out.shape == (B, C, W, H)
    assert attention.shape == (B, W * H, W * H)
    assert jnp.allclose(out, out_ref, atol=1e-5, rtol=1e-5)
    assert jnp.allclose(attention, attn_ref, atol=1e-5, rtol=1e-5)
    assert jnp.allclose(jnp.sum(attention, axis=-1), 1.0, atol=1e-5)

    # Default fast path: bf16 MXU operands, bf16 attention writeback,
    # generation-selected exp dtype -- loose tolerance.
    out_bf, attn_bf = self_attn_pallas(x, gamma, wq, bq, wk, bk, wv, bv, tq=128)
    out_bf = jax.block_until_ready(out_bf)
    attn_bf = jax.block_until_ready(attn_bf)
    assert jnp.allclose(out_bf, out_ref, atol=3e-2, rtol=3e-2)
    assert jnp.allclose(jnp.sum(attn_bf.astype(jnp.float32), axis=-1),
                        1.0, atol=2e-2)

    # Attention-free variant: skips the O(N^2) HBM writeback entirely.
    out_na = self_attn_pallas(x, gamma, wq, bq, wk, bk, wv, bv,
                              tq=128, mxu_dtype=jnp.float32,
                              exp_dtype=jnp.float32, return_attention=False)
    out_na = jax.block_until_ready(out_na)
    assert jnp.allclose(out_na, out_ref, atol=1e-5, rtol=1e-5)

    print("KERNEL_OK")
</pallas_src>

<mosaic_0001>
module attributes {stable_mosaic.version = 11 : i64} {
  func.func @_self_attn_kernel(%arg0: i32, %arg1: i32, %arg2: memref<1xf32, #tpu.memory_space<smem>>, %arg3: memref<1x16x256xf32, #tpu.memory_space<vmem>>, %arg4: memref<20x16xf32, #tpu.memory_space<vmem>>, %arg5: memref<20x1xf32, #tpu.memory_space<vmem>>, %arg6: memref<1x16x128xf32, #tpu.memory_space<vmem>>, %arg7: memref<1x128x256xf32, #tpu.memory_space<vmem>>, %arg8: memref<2x256xf32, #tpu.memory_space<vmem>>, %arg9: memref<2x256xf32, #tpu.memory_space<vmem>>, %arg10: memref<16x256xf32, #tpu.memory_space<vmem>>) attributes {dimension_semantics = [#tpu.dimension_semantics<parallel>, #tpu.dimension_semantics<arbitrary>], iteration_bounds = array<i64: 2, 2>, scalar_prefetch = 0 : i64, scratch_operands = 3 : i64, tpu.core_type = #tpu.core_type<tc>, window_params = [{transform_indices = @transform_0, window_bounds = array<i64: 1>}, {transform_indices = @transform_1, window_bounds = array<i64: 1, 16, 256>}, {pipeline_mode = #tpu.pipeline_mode<synchronous>, transform_indices = @transform_2, window_bounds = array<i64: 20, 16>}, {pipeline_mode = #tpu.pipeline_mode<synchronous>, transform_indices = @transform_3, window_bounds = array<i64: 20, 1>}, {transform_indices = @transform_4, window_bounds = array<i64: 1, 16, 128>}, {transform_indices = @transform_5, window_bounds = array<i64: 1, 128, 256>}]} {
    %c0_i32 = arith.constant 0 : i32
    %0 = arith.cmpi eq, %arg1, %c0_i32 : i32
    %1 = arith.extui %0 : i1 to i32
    %c0_i32_0 = arith.constant 0 : i32
    %2 = arith.cmpi ne, %1, %c0_i32_0 : i32
    scf.if %2 {
      %c0_18 = arith.constant 0 : index
      %c0_19 = arith.constant 0 : index
      %c0_20 = arith.constant 0 : index
      %38 = vector.load %arg3[%c0_18, %c0_19, %c0_20] : memref<1x16x256xf32, #tpu.memory_space<vmem>>, vector<1x16x256xf32>
      %39 = vector.shape_cast %38 : vector<1x16x256xf32> to vector<16x256xf32>
      %c0_21 = arith.constant 0 : index
      %c0_22 = arith.constant 0 : index
      %40 = vector.load %arg4[%c0_21, %c0_22] : memref<20x16xf32, #tpu.memory_space<vmem>>, vector<20x16xf32>
      %cst_23 = arith.constant dense<0.000000e+00> : vector<20x256xf32>
      %41 = tpu.matmul %40, %39, %cst_23 {dimension_numbers = #tpu.dot_dimension_numbers<[1], [0], [0], [1], [0, 0, 1, 1], [], []>} : vector<20x16xf32>, vector<16x256xf32>, vector<20x256xf32> -> vector<20x256xf32>
      %c0_24 = arith.constant 0 : index
      %c0_25 = arith.constant 0 : index
      %42 = vector.load %arg5[%c0_24, %c0_25] : memref<20x1xf32, #tpu.memory_space<vmem>>, vector<20x1xf32>
      %43 = vector.broadcast %42 : vector<20x1xf32> to vector<20x256xf32>
      %44 = arith.addf %41, %43 : vector<20x256xf32>
      %45 = vector.extract_strided_slice %44 {offsets = [0, 0], sizes = [2, 256], strides = [1, 1]} : vector<20x256xf32> to vector<2x256xf32>
      %c0_26 = arith.constant 0 : index
      %c0_27 = arith.constant 0 : index
      %46 = vector.load %arg8[%c0_26, %c0_27] : memref<2x256xf32, #tpu.memory_space<vmem>>, vector<2x256xf32>
      tpu.vector_store %arg8[%c0_26, %c0_27], %45 {strides = array<i32>} : memref<2x256xf32, #tpu.memory_space<vmem>>, vector<2x256xf32>,
      %47 = vector.extract_strided_slice %44 {offsets = [2, 0], sizes = [2, 256], strides = [1, 1]} : vector<20x256xf32> to vector<2x256xf32>
      %c0_28 = arith.constant 0 : index
      %c0_29 = arith.constant 0 : index
      %48 = vector.load %arg9[%c0_28, %c0_29] : memref<2x256xf32, #tpu.memory_space<vmem>>, vector<2x256xf32>
      tpu.vector_store %arg9[%c0_28, %c0_29], %47 {strides = array<i32>} : memref<2x256xf32, #tpu.memory_space<vmem>>, vector<2x256xf32>,
      %49 = vector.extract_strided_slice %44 {offsets = [4, 0], sizes = [16, 256], strides = [1, 1]} : vector<20x256xf32> to vector<16x256xf32>
      %c0_30 = arith.constant 0 : index
      %c0_31 = arith.constant 0 : index
      %50 = vector.load %arg10[%c0_30, %c0_31] : memref<16x256xf32, #tpu.memory_space<vmem>>, vector<16x256xf32>
      tpu.vector_store %arg10[%c0_30, %c0_31], %49 {strides = array<i32>} : memref<16x256xf32, #tpu.memory_space<vmem>>, vector<16x256xf32>,
    } else {
    }
    %c128_i32 = arith.constant 128 : i32
    %3 = arith.muli %arg1, %c128_i32 : i32
    %4 = tpu.assume_multiple %3, 128 : i32
    %c0 = arith.constant 0 : index
    %5 = arith.index_cast %4 : i32 to index
    %6 = vector.load %arg8[%c0, %5] : memref<2x256xf32, #tpu.memory_space<vmem>>, vector<2x128xf32>
    %c0_1 = arith.constant 0 : index
    %c0_2 = arith.constant 0 : index
    %7 = vector.load %arg9[%c0_1, %c0_2] : memref<2x256xf32, #tpu.memory_space<vmem>>, vector<2x256xf32>
    %cst = arith.constant dense<0.000000e+00> : vector<128x256xf32>
    %8 = tpu.matmul %6, %7, %cst {dimension_numbers = #tpu.dot_dimension_numbers<[0], [0], [1], [1], [0, 1, 1, 1], [], []>} : vector<2x128xf32>, vector<2x256xf32>, vector<128x256xf32> -> vector<128x256xf32>
    %cst_3 = arith.constant dense<0xFF800000> : vector<128xf32>
    %9 = vector.multi_reduction <maximumf>, %8, %cst_3 [1] : vector<128x256xf32> to vector<128xf32>
    %10 = vector.shape_cast %9 : vector<128xf32> to vector<128x1xf32>
    %11 = vector.broadcast %10 : vector<128x1xf32> to vector<128x256xf32>
    %12 = arith.subf %8, %11 : vector<128x256xf32>
    %13 = math.exp %12 : vector<128x256xf32>
    %cst_4 = arith.constant dense<0.000000e+00> : vector<128xf32>
    %14 = vector.multi_reduction <add>, %13, %cst_4 [1] : vector<128x256xf32> to vector<128xf32>
    %15 = vector.shape_cast %14 : vector<128xf32> to vector<128x1xf32>
    %16 = tpu.reciprocal %15 {approx = true} : vector<128x1xf32> -> vector<128x1xf32>
    %17 = arith.mulf %15, %16 : vector<128x1xf32>
    %cst_5 = arith.constant 2.000000e+00 : f32
    %18 = vector.broadcast %cst_5 : f32 to vector<128x1xf32>
    %19 = arith.subf %18, %17 : vector<128x1xf32>
    %20 = arith.mulf %16, %19 : vector<128x1xf32>
    %21 = vector.broadcast %20 : vector<128x1xf32> to vector<128x256xf32>
    %22 = arith.mulf %13, %21 : vector<128x256xf32>
    %c0_6 = arith.constant 0 : index
    %c0_7 = arith.constant 0 : index
    %c0_8 = arith.constant 0 : index
    %23 = vector.load %arg7[%c0_6, %c0_7, %c0_8] : memref<1x128x256xf32, #tpu.memory_space<vmem>>, vector<1x128x256xf32>
    %24 = vector.shape_cast %23 : vector<1x128x256xf32> to vector<128x256xf32>
    %25 = vector.shape_cast %22 : vector<128x256xf32> to vector<1x128x256xf32>
    tpu.vector_store %arg7[%c0_6, %c0_7, %c0_8], %25 {strides = array<i32>} : memref<1x128x256xf32, #tpu.memory_space<vmem>>, vector<1x128x256xf32>,
    %c0_9 = arith.constant 0 : index
    %c0_10 = arith.constant 0 : index
    %26 = vector.load %arg10[%c0_9, %c0_10] : memref<16x256xf32, #tpu.memory_space<vmem>>, vector<16x256xf32>
    %cst_11 = arith.constant dense<0.000000e+00> : vector<16x128xf32>
    %27 = tpu.matmul %26, %22, %cst_11 {dimension_numbers = #tpu.dot_dimension_numbers<[1], [1], [0], [0], [0, 0, 1, 0], [], []>} : vector<16x256xf32>, vector<128x256xf32>, vector<16x128xf32> -> vector<16x128xf32>
    %c0_12 = arith.constant 0 : index
    %28 = memref.load %arg2[%c0_12] : memref<1xf32, #tpu.memory_space<smem>>
    %c0_13 = arith.constant 0 : index
    %c0_14 = arith.constant 0 : index
    %29 = arith.index_cast %4 : i32 to index
    %30 = vector.load %arg3[%c0_13, %c0_14, %29] : memref<1x16x256xf32, #tpu.memory_space<vmem>>, vector<1x16x128xf32>
    %31 = vector.shape_cast %30 : vector<1x16x128xf32> to vector<16x128xf32>
    %32 = vector.broadcast %28 : f32 to vector<16x128xf32>
    %33 = arith.mulf %32, %27 : vector<16x128xf32>
    %34 = arith.addf %33, %31 : vector<16x128xf32>
    %c0_15 = arith.constant 0 : index
    %c0_16 = arith.constant 0 : index
    %c0_17 = arith.constant 0 : index
    %35 = vector.load %arg6[%c0_15, %c0_16, %c0_17] : memref<1x16x128xf32, #tpu.memory_space<vmem>>, vector<1x16x128xf32>
    %36 = vector.shape_cast %35 : vector<1x16x128xf32> to vector<16x128xf32>
    %37 = vector.shape_cast %34 : vector<16x128xf32> to vector<1x16x128xf32>
    tpu.vector_store %arg6[%c0_15, %c0_16, %c0_17], %37 {strides = array<i32>} : memref<1x16x128xf32, #tpu.memory_space<vmem>>, vector<1x16x128xf32>,
    return
  }
  func.func @transform_0(%arg0: i32, %arg1: i32) -> i32 {
    %c0_i32 = arith.constant 0 : i32
    %c0_i32_0 = arith.constant 0 : i32
    return %c0_i32 : i32
  }
  func.func @transform_1(%arg0: i32, %arg1: i32) -> (i32, i32, i32) {
    %c0_i32 = arith.constant 0 : i32
    %c0_i32_0 = arith.constant 0 : i32
    %c0_i32_1 = arith.constant 0 : i32
    return %arg0, %c0_i32, %c0_i32_0 : i32, i32, i32
  }
  func.func @transform_2(%arg0: i32, %arg1: i32) -> (i32, i32) {
    %c0_i32 = arith.constant 0 : i32
    %c0_i32_0 = arith.constant 0 : i32
    %c0_i32_1 = arith.constant 0 : i32
    return %c0_i32, %c0_i32_0 : i32, i32
  }
  func.func @transform_3(%arg0: i32, %arg1: i32) -> (i32, i32) {
    %c0_i32 = arith.constant 0 : i32
    %c0_i32_0 = arith.constant 0 : i32
    %c0_i32_1 = arith.constant 0 : i32
    return %c0_i32, %c0_i32_0 : i32, i32
  }
  func.func @transform_4(%arg0: i32, %arg1: i32) -> (i32, i32, i32) {
    %c0_i32 = arith.constant 0 : i32
    %c0_i32_0 = arith.constant 0 : i32
    return %arg0, %c0_i32, %arg1 : i32, i32, i32
  }
  func.func @transform_5(%arg0: i32, %arg1: i32) -> (i32, i32, i32) {
    %c0_i32 = arith.constant 0 : i32
    %c0_i32_0 = arith.constant 0 : i32
    return %arg0, %arg1, %c0_i32 : i32, i32, i32
  }
}

</mosaic_0001>

<bundles_post_ra>
// kernel: tpu_custom_call.1
= control target key start
LH: loop header
LB: loop body
LE: loop exit
PB: predicated region body
PF: predicated region fallthrough
CT: control target
= control target key end

     0   :  { %s2057_s0 = inlined_call_operand.<no memory space> [shape: f32[1], index: 0, kind: input, shape index: {}]   ;;  %s2058_s1 = inlined_call_operand.vmem [shape: f32[2,16,256], index: 1, kind: input, shape index: {}]   ;;  %s2059_s2 = inlined_call_operand.vmem [shape: f32[20,16], index: 2, kind: input, shape index: {}]   ;;  %s2060_s3 = inlined_call_operand.vmem [shape: f32[20,1], index: 3, kind: input, shape index: {}]   ;;  %s2061_s4 = inlined_call_operand.hbm [shape: f32[2,16,256], index: 4, kind: output, shape index: {0}]   ;;  %s2062_s5 = inlined_call_operand.hbm [shape: f32[2,256,256], index: 5, kind: output, shape index: {1}]  }
   0x1   :  { %2066 = sst [smem:[#allocation15_spill]] %s2058_s1 }
   0x2   :  { %2067 = sst [smem:[#allocation16_spill]] %s2059_s2 }
   0x3   :  { %2068 = sst [smem:[#allocation17_spill]] %s2060_s3 }
   0x4   :  { %11 = sst [smem:[#allocation5]] %s2057_s0 }
   0x5   :  { %12 = vsyncpa [#allocation7], 0 }
   0x6   :  { %14 = vsyncpa [#allocation7 + $0x1], 0 }
   0x7   :  { %15 = vsyncpa [#allocation9], 0 }
   0x8   :  { %17 = vsyncpa [#allocation9 + $0x1], 0  ;;  %s1560_s20 = smov 0   ;;  %s1562_s21 = smov 0  }
   0x9   :  { %s1564_s22 = smov 0   ;;  %s1566_s23 = smov 0  }
   0xa   :  { %s1568_s24 = smov 0   ;;  %s1570_s25 = smov 0  }
   0xb   :  { %s1572_s26 = smov 0   ;;  %s1574_s27 = smov 0  }
   0xc LB: > { %2069 = sst [smem:[#allocation12_spill]] %s1516_s26  ;;  %s1145_s0 = sadd.s32 4294967295, %s1520_s27   ;;  %s1520_s27 = sphi %s1574_s27, %s23_s27   ;;  %s1516_s26 = sphi %s1572_s26, %s2079_s26   ;;  %s1512_s25 = sphi %s1570_s25, %s2084_s25   ;;  %s1508_s24 = sphi %s1568_s24, %s2077_s24   ;;  %s1504_s23 = sphi %s1566_s23, %s2083_s23   ;;  %s1500_s22 = sphi %s1564_s22, %s2082_s22   ;;  %s1496_s21 = sphi %s1562_s21, %s2081_s21   ;;  %s1492_s20 = sphi %s1560_s20, %s2080_s20  }
   0xd   : > { %s1146_s28 = sadd.s32 4294967294, %s1520_s27   ;;  %s32_s29 = sadd.s32 1, %s1512_s25 }
   0xe   : > { %p33_p0 = scmp.ge.s32.totalorder %s32_s29, 2  ;;  %s35_s30 = sadd.s32 1, %s1516_s26 }
   0xf   : > { %p143_p1 = scmp.ne.s32.totalorder %s1500_s22, %s1496_s21  ;;  %p144_p2 = scmp.eq.s32.totalorder %s1145_s0, 3 }
  0x10   : > { %s2086_s29 = smov (%p33_p0, %s32_s29), 0  ;;  %s2088_s30 = smov (!%p33_p0, %s35_s30), %s1516_s26 }
  0x11   : > { %2070 = sst [smem:[#allocation13_spill]] %s2086_s29  ;;  %s129_s6 = ssub.s32 %s1512_s25, %s2086_s29 }
  0x12   : > { %p1611_p3 = por %p144_p2, %p143_p1  ;;  %p37_p4 = scmp.ge.s32.totalorder %s2088_s30, 2 }
  0x13   : > { %p149_p5 = scmp.ne.s32.totalorder %s1496_s21, %s1492_s20  ;;  %p150_p6 = scmp.eq.s32.totalorder %s1146_s28, 3 }
  0x14   : > { %p1149_p7 = scmp.ge.s32.totalorder %s1520_s27, 1  ;;  %s2090_s30 = smov (%p37_p4, %s2088_s30), 0 }
  0x15   : > { %2072 = sst [smem:[#allocation14_spill]] %s2090_s30  ;;  %p1620_p8 = por %p150_p6, %p149_p5 }
  0x16   : > { %p213_p9 = scmp.lt.s32.totalorder %s1520_s27, 5  ;;  %s128_s9 = ssub.s32 %s1516_s26, %s2090_s30 }
  0x17   : > { %s133_s10 = sadd.s32 1, %s1500_s22  ;;  %s130_s11 = sor.u32 %s129_s6, %s128_s9 }
  0x18   : > { %p214_p10 = pnand %p1149_p7, %p213_p9  ;;  %p131_p11 = scmp.eq.s32.totalorder %s130_s11, 0 }
  0x19   : > { %s1632_s13 = sand.u32 (!%p214_p10), 1, %s1496_s21   ;;  %p246_p12 = scmp.lt.s32.totalorder (!%p214_p10), %s1508_s24, 1 }
  0x1a   : > { %s1629_s12 = scalar_select %p131_p11, %s1500_s22, %s133_s10  }
  0x1b   : > { %217 = sbr.rel (%p214_p10) target bundleno = 1083 (0x43b), region = 36  ;;  %s1150_s14 = sshll.u32 (!%p214_p10), %s1632_s13, 4 }
  0x1c   : > { %s1151_s15 = sshll.u32 (!%p214_p10), %s1632_s13, 8  ;;  %s2074_s1 = sld [smem:[#allocation15_spill]] (!%p214_p10) }
  0x1d   : > { %s1643_s28 = scalar_lea.vmem (!%p214_p10), [#allocation6], %s1150_s14  ;;  %s1645_s6 = scalar_lea.vmem (!%p214_p10), [#allocation8], %s1151_s15 }
  0x1e   : > { %p1154_p13 = scmp.ne.s32.totalorder (!%p214_p10), %s1504_s23, 0 }
  0x20   : > { %s247_s16 = scalar_select %p246_p12, %s1508_s24, 1 }
  0x21   : > { %255 = sbr.rel (%p1154_p13) target bundleno = 189 (0xbd), region = 40  ;;  %s2075_s2 = sld [smem:[#allocation16_spill]] (!%p1154_p13) }
  0x22   : > { %s1208_s17 = sshll.u32 %s247_s16, 5  ;;  %s2076_s3 = sld [smem:[#allocation17_spill]] (!%p1154_p13) }
  0x23   : > { %s1641_s0 = scalar_lea.vmem %s2074_s1, %s1208_s17 }
  0x26   : > { %v258_v0 = vld [vmem:[%s1641_s0 + $0x10] sm:$0xff]  ;;  %v259_v1 = vld [vmem:[%s1641_s0 + $0x18] sm:$0xff]  ;;  %v256_v2 = vld [vmem:[%s1641_s0] sm:$0xff]  ;;  %vm281_vm0 = vcmask 130048   ;;  %v1522_v8 = vmov 0   ;;  %vm346_vm1 = vcmask 1041408  }
  0x27   : > { %1210 = vmatpush.msra.mxu2 %v258_v0  ;;  %1212 = vmatpush.msra.mxu3 %v259_v1  ;;  %v257_v3 = vld [vmem:[%s1641_s0 + $0x8] sm:$0xff]  ;;  %v260_v5 = vld [vmem:[%s2075_s2] sm:$0xff]  ;;  %v262_v9 = vld [vmem:[%s2075_s2 + $0x10] sm:$0xf]  ;;  %vm360_vm2 = vcmask 1043456  }
  0x28   : > { %v261_v4 = vld [vmem:[%s2075_s2 + $0x8] sm:$0xff]  ;;  %331 = vmatpush.msra.mxu1 %v259_v1  ;;  %305 = vmatpush.msra.mxu0 %v258_v0  ;;  %v263_v6 = vld [vmem:[%s2076_s3] sm:$0xff]  ;;  %v265_v7 = vld [vmem:[%s2076_s3 + $0x10] sm:$0xf] }
  0x29   : > { %1211 = vmatpush.msra.mxu2 %v256_v2  ;;  %1213 = vmatpush.msra.mxu3 %v257_v3  ;;  %v264_v10 = vld [vmem:[%s2076_s3 + $0x8] sm:$0xff] }
  0x2a   : > { %1156 = vmatmul.msk.f32.vlgmr.msra.gmra.mxu2 %vm281_vm0, %v261_v4  ;;  %1159 = vmatmul.msk.f32.vlgmr.msra.gmra.mxu3 %vm281_vm0, %v261_v4 }
  0x2b   : > { %332 = vmatpush.msra.mxu1 %v257_v3  ;;  %306 = vmatpush.msra.mxu0 %v256_v2 }
  0x2c   : > { %1158 = vmatmul.msk.f32.vlgmr.msra.gmra.mxu1 %vm281_vm0, %v260_v5  ;;  %1155 = vmatmul.msk.f32.vlgmr.msra.gmra.mxu0 %vm281_vm0, %v260_v5 }
  0x2d   : > { %1296 = vset.pattern.permute.xlu0 %v1522_v8  ;;  %1297 = vset.pattern.permute.xlu1 %v1522_v8 }
  0x2e   : > { %268 = vperm.xlu0 %1296, %v263_v6   ;;  %278 = vperm.xlu1 %1297, %v265_v7  }
  0x32   : > { %1157 = vmatmul.msk.f32.gmra.mxu2 %vm281_vm0, %v262_v9  ;;  %1160 = vmatmul.msk.f32.gmra.mxu3 %vm281_vm0, %v262_v9 }
  0x36   : > { %273 = vperm.xlu0 %1296, %v264_v10  }
  0xa0   : > { %v269_v11 = vpop.permute.xlu0 %268  ;;  %v279_v29 = vpop.permute.xlu1 %278 }
  0xa8   : > { %v274_v16 = vpop.permute.xlu0 %273 }
  0xa9   : > { %v334_v12 = vpop.f32.mrf.mxu1  ;;  %v308_v13 = vpop.f32.mrf.mxu0 }
  0xaa   : > { %v335_v14 = vadd.f32 %v334_v12, %v269_v11  ;;  %v309_v15 = vadd.f32 %v308_v13, %v269_v11 }
  0xac   : > { %v345_v17 = vrot.slane %v335_v14, 6  ;;  %351 = vst.sshfl [vmem:[#allocation1 + $0x8] sm:$0xff pattern:$0x73625140] %v335_v14  ;;  %v364_v18 = vrot.slane %v335_v14, 4  ;;  %v361_v22 = vrot.slane %v309_v15, 4 }
  0xad   : > { %350 = vst.sshfl [vmem:[#allocation1] sm:$0xff pattern:$0x73625140] %v309_v15  ;;  %v311_v19 = vpop.f32.mrf.mxu2  ;;  %v337_v20 = vpop.f32.mrf.mxu3 }
  0xae   : > { %v347_v21 = vsel %vm346_vm1, %v309_v15, %v345_v17  ;;  %v312_v23 = vadd.f32 %v311_v19, %v274_v16  ;;  %v338_v24 = vadd.f32 %v337_v20, %v274_v16 }
  0xaf   : > { %349 = vst [vmem:[#allocation2] sm:$0xf] %v347_v21 }
  0xb0   : > { %v362_v25 = vrot.slane %v312_v23, 4  ;;  %v365_v26 = vrot.slane %v338_v24, 4 }
  0xb2   : > { %v363_v27 = vsel %vm360_vm2, %v361_v22, %v362_v25  ;;  %v366_v28 = vsel %vm360_vm2, %v364_v18, %v365_v26 }
  0xb3   : > { %375 = vst [vmem:[#allocation4 + $0x10] sm:$0xff] %v363_v27 }
  0xb4   : > { %v353_v30 = vld [vmem:[#allocation1 + $0x1] ss:$4 sm:$0xff]  ;;  %376 = vst [vmem:[#allocation4] sm:$0xff] %v366_v28 }
  0xb5   : > { %355 = vst [vmem:[#allocation3] sm:$0xf] %v353_v30  ;;  %v314_v31 = vpop.f32.mrf.mxu2  ;;  %v340_v32 = vpop.f32.mrf.mxu3 }
  0xb6   : > { %v315_v33 = vadd.f32 %v314_v31, %v279_v29  ;;  %v341_v34 = vadd.f32 %v340_v32, %v279_v29 }
  0xb8   : > { %v367_v35 = vrot.slane %v315_v33, 4  ;;  %v369_v36 = vrot.slane %v341_v34, 4 }
  0xba   : > { %v368_v37 = vsel %vm360_vm2, %v362_v25, %v367_v35  ;;  %v370_v38 = vsel %vm360_vm2, %v365_v26, %v369_v36 }
  0xbb   : > { %377 = vst [vmem:[#allocation4 + $0x18] sm:$0xff] %v368_v37 }
  0xbc   : > { %378 = vst [vmem:[#allocation4 + $0x8] sm:$0xff] %v370_v38 }
  0xbd PF: > { %s1161_s14 = sshll.u32 %s1504_s23, 7  ;;  %v385_v39 = vld [vmem:[#allocation3] sm:$0xf]  ;;  %vm471_vm3 = vcmask 1041408   ;;  %vm422_vm4 = vcmask 15360   ;;  %s1209_s18 = sshll.u32 %s1504_s23, 5 }
  0xbe   : > { %s1681_s15 = sshra.s32 %s1161_s14, 7  ;;  %419 = vst [vmem:[#allocation1] ss:$4 sm:$0xff] %v385_v39  ;;  %s1204_s19 = sshll.u32 %s1508_s24, 6 }
  0xbf   : > { %s1162_s16 = sshll.u32 %s1681_s15, 1  ;;  %s1024_s9 = sadd.s32 %s1209_s18, %s1204_s19 }
  0xc0   : > { %s383_s17 = scalar_lea.vmem [#allocation2], %s1162_s16  ;;  %s1205_s10 = sshll.u32 %s1024_s9, 3 }
  0xc1   : > { %v384_v40 = vld [vmem:[%s383_s17] sm:$0x3]  ;;  %s1026_s16 = scalar_lea.hbm %s2062_s5, %s1205_s10  ;;  %s1027_s17 = sshll.u32 %s1645_s6, 4  ;;  %s1028_s17 = int_to_ptr.vmem [resolvable:$true] %s1027_s17 }
  0xc2   : > { %386 = vxpose.xlu0.b32.start.end [1/1] (short) %v384_v40, 128  ;;  %s1029_s1 = sshll.u32 %s1026_s16, 4  ;;  %s994_s2 = scalar_lea.sflag [#allocation9], %s1632_s13  ;;  %s1030_s1 = int_to_ptr.hbm [resolvable:$true] %s1029_s1 }
  0xc3   : > { %s1408_s3 = sshra.s32 %s1030_s1, 4  ;;  %s1414_s18 = scalar_lea.hbm %s2062_s5, 1024  ;;  %s1409_s3 = int_to_ptr.hbm [resolvable:$true] %s1408_s3 }
  0xc4   : > { %s1410_s30 = scalar_lea.hbm %s1409_s3, 256  ;;  %p1415_p4 = scmp.lt.s32.totalorder %s1409_s3, %s2062_s5 }
  0xc5   : > { %v420_v41 = vld.sshfl [vmem:[#allocation1] sm:$0xff pattern:$0x73625140]  ;;  %v421_v42 = vld.sshfl [vmem:[#allocation1 + $0x8] sm:$0xff pattern:$0x73625140]  ;;  %p1411_p0 = scmp.ne.s32.totalorder %s1409_s3, %s1410_s30  ;;  %p1416_p5 = scmp.lt.s32.totalorder %s1414_s18, %s1410_s30 }
  0xc6   : > { %1163 = vmatpush.msk.msra.mxu0 %vm471_vm3, %v420_v41  ;;  %1180 = vmatpush.msk.msra.mxu1 %vm471_vm3, %v421_v42 }
  0xc7   : > { %p1412_p1 = pnand %p1411_p0, %p1611_p3  ;;  %p1417_p6 = por %p1416_p5, %p1415_p4 }
  0xc9   : > { %p1413_p2 = pneg %p1412_p1 }
  0xcb   : > { %p1418_p7 = pnand %p1417_p6, %p1413_p2 }
 0x166   : > { %v402_v43 = vpop.trf.xlu0 }
 0x167   : > { %1164 = vmatmul.msk.f32.vlgmr.msra.gmra.mxu0 %vm422_vm4, %v402_v43  ;;  %1181 = vmatmul.msk.f32.vlgmr.msra.gmra.mxu1 %vm422_vm4, %v402_v43 }
 0x16e   : > { %v403_v44 = vpop.trf.xlu0 }
 0x16f   : > { %1165 = vmatmul.msk.f32.gmra.mxu0 %vm422_vm4, %v403_v44  ;;  %1182 = vmatmul.msk.f32.gmra.mxu1 %vm422_vm4, %v403_v44 }
 0x176   : > { %v404_v45 = vpop.trf.xlu0 }
 0x177   : > { %1166 = vmatmul.msk.f32.gmra.mxu0 %vm422_vm4, %v404_v45  ;;  %1183 = vmatmul.msk.f32.gmra.mxu1 %vm422_vm4, %v404_v45 }
 0x17e   : > { %v405_v46 = vpop.trf.xlu0 }
 0x17f   : > { %1167 = vmatmul.msk.f32.gmra.mxu0 %vm422_vm4, %v405_v46  ;;  %1184 = vmatmul.msk.f32.gmra.mxu1 %vm422_vm4, %v405_v46 }
 0x186   : > { %v406_v47 = vpop.trf.xlu0 }
 0x187   : > { %1168 = vmatmul.msk.f32.gmra.mxu0 %vm422_vm4, %v406_v47  ;;  %1185 = vmatmul.msk.f32.gmra.mxu1 %vm422_vm4, %v406_v47 }
 0x18e   : > { %v407_v48 = vpop.trf.xlu0 }
 0x18f   : > { %1169 = vmatmul.msk.f32.gmra.mxu0 %vm422_vm4, %v407_v48  ;;  %1186 = vmatmul.msk.f32.gmra.mxu1 %vm422_vm4, %v407_v48 }
 0x196   : > { %v408_v49 = vpop.trf.xlu0 }
 0x197   : > { %1170 = vmatmul.msk.f32.gmra.mxu0 %vm422_vm4, %v408_v49  ;;  %1187 = vmatmul.msk.f32.gmra.mxu1 %vm422_vm4, %v408_v49 }
 0x19e   : > { %v409_v50 = vpop.trf.xlu0 }
 0x19f   : > { %1171 = vmatmul.msk.f32.gmra.mxu0 %vm422_vm4, %v409_v50  ;;  %1188 = vmatmul.msk.f32.gmra.mxu1 %vm422_vm4, %v409_v50 }
 0x1a6   : > { %v410_v51 = vpop.trf.xlu0 }
 0x1a7   : > { %1172 = vmatmul.msk.f32.gmra.mxu0 %vm422_vm4, %v410_v51  ;;  %1189 = vmatmul.msk.f32.gmra.mxu1 %vm422_vm4, %v410_v51 }
 0x1ae   : > { %v411_v52 = vpop.trf.xlu0 }
 0x1af   : > { %1173 = vmatmul.msk.f32.gmra.mxu0 %vm422_vm4, %v411_v52  ;;  %1190 = vmatmul.msk.f32.gmra.mxu1 %vm422_vm4, %v411_v52 }
 0x1b6   : > { %v412_v53 = vpop.trf.xlu0 }
 0x1b7   : > { %1174 = vmatmul.msk.f32.gmra.mxu0 %vm422_vm4, %v412_v53  ;;  %1191 = vmatmul.msk.f32.gmra.mxu1 %vm422_vm4, %v412_v53 }
 0x1be   : > { %v413_v54 = vpop.trf.xlu0 }
 0x1bf   : > { %1175 = vmatmul.msk.f32.gmra.mxu0 %vm422_vm4, %v413_v54  ;;  %1192 = vmatmul.msk.f32.gmra.mxu1 %vm422_vm4, %v413_v54 }
 0x1c6   : > { %v414_v55 = vpop.trf.xlu0 }
 0x1c7   : > { %1176 = vmatmul.msk.f32.gmra.mxu0 %vm422_vm4, %v414_v55  ;;  %1193 = vmatmul.msk.f32.gmra.mxu1 %vm422_vm4, %v414_v55 }
 0x1ce   : > { %v415_v56 = vpop.trf.xlu0 }
 0x1cf   : > { %1177 = vmatmul.msk.f32.gmra.mxu0 %vm422_vm4, %v415_v56  ;;  %1194 = vmatmul.msk.f32.gmra.mxu1 %vm422_vm4, %v415_v56 }
 0x1d6   : > { %v416_v57 = vpop.trf.xlu0 }
 0x1d7   : > { %1178 = vmatmul.msk.f32.gmra.mxu0 %vm422_vm4, %v416_v57  ;;  %1195 = vmatmul.msk.f32.gmra.mxu1 %vm422_vm4, %v416_v57 }
 0x1de   : > { %v417_v58 = vpop.trf.xlu0 }
 0x1df   : > { %1179 = vmatmul.msk.f32.gmra.mxu0 %vm422_vm4, %v417_v58  ;;  %1196 = vmatmul.msk.f32.gmra.mxu1 %vm422_vm4, %v417_v58 }
 0x1e4   : > { %v1716_v59 = vpop.f32.mrf.mxu0  ;;  %v1718_v60 = vpop.f32.mrf.mxu1 }
 0x1e5   : > { %v606_v42 = vmax.f32 %v1716_v59, %v1718_v60 }
 0x1ec   : > { %v1720_v61 = vpop.f32.mrf.mxu0  ;;  %v1722_v62 = vpop.f32.mrf.mxu1 }
 0x1ed   : > { %v609_v41 = vmax.f32 %v1720_v61, %v1722_v62 }
 0x1f4   : > { %v1724_v63 = vpop.f32.mrf.mxu0  ;;  %v1726_v0 = vpop.f32.mrf.mxu1 }
 0x1f5   : > { %v612_v40 = vmax.f32 %v1724_v63, %v1726_v0 }
 0x1fc   : > { %v1728_v1 = vpop.f32.mrf.mxu0  ;;  %v1730_v2 = vpop.f32.mrf.mxu1 }
 0x1fd   : > { %v615_v36 = vmax.f32 %v1728_v1, %v1730_v2 }
 0x204   : > { %v1732_v3 = vpop.f32.mrf.mxu0  ;;  %v1734_v4 = vpop.f32.mrf.mxu1 }
 0x205   : > { %v618_v39 = vmax.f32 %v1732_v3, %v1734_v4 }
 0x20c   : > { %v1736_v5 = vpop.f32.mrf.mxu0  ;;  %v1738_v6 = vpop.f32.mrf.mxu1 }
 0x20d   : > { %v621_v34 = vmax.f32 %v1736_v5, %v1738_v6 }
 0x214   : > { %v1740_v7 = vpop.f32.mrf.mxu0  ;;  %v1742_v8 = vpop.f32.mrf.mxu1 }
 0x215   : > { %v624_v38 = vmax.f32 %v1740_v7, %v1742_v8 }
 0x21c   : > { %v1744_v9 = vpop.f32.mrf.mxu0  ;;  %v1746_v10 = vpop.f32.mrf.mxu1 }
 0x21d   : > { %v627_v32 = vmax.f32 %v1744_v9, %v1746_v10 }
 0x224   : > { %v1748_v11 = vpop.f32.mrf.mxu0  ;;  %v1750_v12 = vpop.f32.mrf.mxu1 }
 0x225   : > { %v630_v37 = vmax.f32 %v1748_v11, %v1750_v12 }
 0x22c   : > { %v1752_v13 = vpop.f32.mrf.mxu0  ;;  %v1754_v14 = vpop.f32.mrf.mxu1 }
 0x22d   : > { %v633_v27 = vmax.f32 %v1752_v13, %v1754_v14 }
 0x234   : > { %v1756_v15 = vpop.f32.mrf.mxu0  ;;  %v1758_v16 = vpop.f32.mrf.mxu1 }
 0x235   : > { %v636_v35 = vmax.f32 %v1756_v15, %v1758_v16 }
 0x23c   : > { %v1760_v17 = vpop.f32.mrf.mxu0  ;;  %v1762_v18 = vpop.f32.mrf.mxu1 }
 0x23d   : > { %v639_v24 = vmax.f32 %v1760_v17, %v1762_v18 }
 0x244   : > { %v529_v19 = vpop.f32.mrf.mxu0  ;;  %v594_v20 = vpop.f32.mrf.mxu1 }
 0x245   : > { %v642_v21 = vmax.f32 %v529_v19, %v594_v20 }
 0x247   : > { %643 = vmax.xlane.f32.xlu2 %v642_v21 }
 0x24c   : > { %v1764_v22 = vpop.f32.mrf.mxu0  ;;  %v1766_v23 = vpop.f32.mrf.mxu1 }
 0x24d   : > { %v645_v33 = vmax.f32 %v1764_v22, %v1766_v23 }
 0x24f   : > { %640 = vmax.xlane.f32.xlu2 %v639_v24 }
 0x254   : > { %v535_v25 = vpop.f32.mrf.mxu0  ;;  %v600_v26 = vpop.f32.mrf.mxu1 }
 0x255   : > { %v648_v28 = vmax.f32 %v535_v25, %v600_v26 }
 0x257   : > { %634 = vmax.xlane.f32.xlu2 %v633_v27  ;;  %649 = vmax.xlane.f32.xlu1 %v648_v28 }
 0x25c   : > { %v538_v29 = vpop.f32.mrf.mxu0  ;;  %v603_v30 = vpop.f32.mrf.mxu1 }
 0x25d   : > { %v651_v31 = vmax.f32 %v538_v29, %v603_v30 }
 0x25f   : > { %628 = vmax.xlane.f32.xlu2 %v627_v32  ;;  %646 = vmax.xlane.f32.xlu1 %v645_v33 }
 0x260   : > { %652 = vmax.xlane.f32.xlu0 %v651_v31 }
 0x267   : > { %622 = vmax.xlane.f32.xlu2 %v621_v34  ;;  %637 = vmax.xlane.f32.xlu1 %v636_v35 }
 0x26f   : > { %616 = vmax.xlane.f32.xlu2 %v615_v36  ;;  %631 = vmax.xlane.f32.xlu1 %v630_v37 }
 0x277   : > { %625 = vmax.xlane.f32.xlu1 %v624_v38 }
 0x27f   : > { %619 = vmax.xlane.f32.xlu1 %v618_v39 }
 0x287   : > { %613 = vmax.xlane.f32.xlu1 %v612_v40 }
 0x28f   : > { %610 = vmax.xlane.f32.xlu1 %v609_v41 }
 0x297   : > { %607 = vmax.xlane.f32.xlu1 %v606_v42 }
 0x2ba   : > { %v644_v43 = vpop.xlane.xlu2 %643 }
 0x2bb   : > { %v678_v44 = vsub.f32 %v529_v19, %v644_v43  ;;  %v679_v45 = vsub.f32 %v594_v20, %v644_v43 }
 0x2bd   : > { %v734_v46 = vmul.f32 1.442695, %v678_v44  ;;  %v736_v47 = vmul.f32 1.442695, %v679_v45 }
 0x2bf   : > { %1298 = vpow2.f32 %v734_v46 }
 0x2c0   : > { %1300 = vpow2.f32 %v736_v47 }
 0x2c2   : > { %v641_v20 = vpop.xlane.xlu2 %640 }
 0x2c3   : > { %v676_v36 = vsub.f32 %v1760_v17, %v641_v20 }
 0x2c5   : > { %v1794_v48 = vpop.eup %1298  ;;  %v730_v40 = vmul.f32 1.442695, %v676_v36 }
 0x2c6   : > { %v1796_v49 = vpop.eup %1300 }
 0x2c7   : > { %v786_v50 = vadd.f32 %v1796_v49, %v1794_v48 }
 0x2c9   : > { %787 = vadd.xlane.f32.xlu1 %v786_v50 }
 0x2ca   : > { %v650_v51 = vpop.xlane.xlu1 %649  ;;  %v635_v37 = vpop.xlane.xlu2 %634 }
 0x2cb   : > { %v682_v52 = vsub.f32 %v535_v25, %v650_v51  ;;  %v683_v53 = vsub.f32 %v600_v26, %v650_v51  ;;  %v672_v50 = vsub.f32 %v1752_v13, %v635_v37 }
 0x2cd   : > { %v742_v54 = vmul.f32 1.442695, %v682_v52  ;;  %v744_v55 = vmul.f32 1.442695, %v683_v53  ;;  %v722_v13 = vmul.f32 1.442695, %v672_v50 }
 0x2cf   : > { %1302 = vpow2.f32 %v742_v54 }
 0x2d0   : > { %1304 = vpow2.f32 %v744_v55 }
 0x2d2   : > { %v647_v56 = vpop.xlane.xlu1 %646  ;;  %v629_v51 = vpop.xlane.xlu2 %628 }
 0x2d3   : > { %v653_v57 = vpop.xlane.xlu0 %652  ;;  %v680_v24 = vsub.f32 %v1764_v22, %v647_v56  ;;  %v681_v31 = vsub.f32 %v1766_v23, %v647_v56  ;;  %v677_v23 = vsub.f32 %v1762_v18, %v641_v20 }
 0x2d4   : > { %v684_v58 = vsub.f32 %v538_v29, %v653_v57  ;;  %v685_v19 = vsub.f32 %v603_v30, %v653_v57 }
 0x2d5   : > { %v1800_v21 = vpop.eup %1302  ;;  %v738_v33 = vmul.f32 1.442695, %v680_v24  ;;  %v740_v30 = vmul.f32 1.442695, %v681_v31  ;;  %v732_v42 = vmul.f32 1.442695, %v677_v23 }
 0x2d6   : > { %v746_v27 = vmul.f32 1.442695, %v684_v58  ;;  %v1803_v28 = vpop.eup %1304  ;;  %v748_v25 = vmul.f32 1.442695, %v685_v19 }
 0x2d7   : > { %v792_v26 = vadd.f32 %v1803_v28, %v1800_v21 }
 0x2d8   : > { %1306 = vpow2.f32 %v746_v27  ;;  %v669_v27 = vsub.f32 %v1746_v10, %v629_v51 }
 0x2d9   : > { %793 = vadd.xlane.f32.xlu2 %v792_v26  ;;  %1308 = vpow2.f32 %v748_v25 }
 0x2da   : > { %v638_v32 = vpop.xlane.xlu1 %637  ;;  %1310 = vpow2.f32 %v738_v33  ;;  %v623_v33 = vpop.xlane.xlu2 %622 }
 0x2db   : > { %v674_v29 = vsub.f32 %v1756_v15, %v638_v32  ;;  %v675_v34 = vsub.f32 %v1758_v16, %v638_v32  ;;  %1312 = vpow2.f32 %v740_v30 }
 0x2dd   : > { %v726_v22 = vmul.f32 1.442695, %v674_v29  ;;  %v728_v35 = vmul.f32 1.442695, %v675_v34 }
 0x2de   : > { %v1812_v38 = vpop.eup %1306 }
 0x2df   : > { %1314 = vpow2.f32 %v726_v22  ;;  %v1814_v39 = vpop.eup %1308 }
 0x2e0   : > { %1316 = vpow2.f32 %v728_v35  ;;  %v795_v16 = vadd.f32 %v1814_v39, %v1812_v38  ;;  %v1820_v43 = vpop.eup %1310  ;;  %v716_v35 = vmul.f32 1.442695, %v669_v27 }
 0x2e1   : > { %v1822_v44 = vpop.eup %1312  ;;  %1318 = vpow2.f32 %v730_v40 }
 0x2e2   : > { %v632_v15 = vpop.xlane.xlu1 %631  ;;  %796 = vadd.xlane.f32.xlu2 %v795_v16  ;;  %1320 = vpow2.f32 %v732_v42  ;;  %v789_v53 = vadd.f32 %v1822_v44, %v1820_v43  ;;  %v617_v50 = vpop.xlane.xlu2 %616 }
 0x2e3   : > { %v670_v41 = vsub.f32 %v1748_v11, %v632_v15  ;;  %v671_v17 = vsub.f32 %v1750_v12, %v632_v15  ;;  %v673_v12 = vsub.f32 %v1754_v14, %v635_v37 }
 0x2e5   : > { %v718_v18 = vmul.f32 1.442695, %v670_v41  ;;  %v720_v45 = vmul.f32 1.442695, %v671_v17  ;;  %v1824_v46 = vpop.eup %1314  ;;  %v724_v14 = vmul.f32 1.442695, %v673_v12 }
 0x2e6   : > { %v1826_v47 = vpop.eup %1316 }
 0x2e7   : > { %1322 = vpow2.f32 %v718_v18  ;;  %v780_v11 = vadd.f32 %v1826_v47, %v1824_v46  ;;  %v1836_v56 = vpop.eup %1318 }
 0x2e8   : > { %1324 = vpow2.f32 %v720_v45  ;;  %v1838_v19 = vpop.eup %1320 }
 0x2e9   : > { %781 = vadd.xlane.f32.xlu1 %v780_v11  ;;  %v783_v25 = vadd.f32 %v1838_v19, %v1836_v56 }
 0x2ea   : > { %v626_v52 = vpop.xlane.xlu1 %625  ;;  %790 = vadd.xlane.f32.xlu2 %v789_v53 }
 0x2eb   : > { %v666_v54 = vsub.f32 %v1740_v7, %v626_v52  ;;  %v667_v55 = vsub.f32 %v1742_v8, %v626_v52  ;;  %v668_v7 = vsub.f32 %v1744_v9, %v629_v51 }
 0x2ed   : > { %v710_v57 = vmul.f32 1.442695, %v666_v54  ;;  %v712_v58 = vmul.f32 1.442695, %v667_v55  ;;  %v1840_v20 = vpop.eup %1322  ;;  %v714_v30 = vmul.f32 1.442695, %v668_v7 }
 0x2ee   : > { %v1842_v24 = vpop.eup %1324 }
 0x2ef   : > { %1326 = vpow2.f32 %v710_v57  ;;  %v774_v8 = vadd.f32 %v1842_v24, %v1840_v20 }
 0x2f0   : > { %1328 = vpow2.f32 %v712_v58 }
 0x2f1   : > { %1330 = vpow2.f32 %v722_v13  ;;  %775 = vadd.xlane.f32.xlu1 %v774_v8 }
 0x2f2   : > { %1332 = vpow2.f32 %v724_v14  ;;  %v620_v31 = vpop.xlane.xlu1 %619  ;;  %784 = vadd.xlane.f32.xlu2 %v783_v25 }
 0x2f3   : > { %v662_v26 = vsub.f32 %v1732_v3, %v620_v31  ;;  %v663_v32 = vsub.f32 %v1734_v4, %v620_v31  ;;  %v664_v3 = vsub.f32 %v1736_v5, %v623_v33  ;;  %v665_v4 = vsub.f32 %v1738_v6, %v623_v33 }
 0x2f5   : > { %v1852_v29 = vpop.eup %1326  ;;  %v702_v9 = vmul.f32 1.442695, %v662_v26  ;;  %v704_v34 = vmul.f32 1.442695, %v663_v32  ;;  %v706_v42 = vmul.f32 1.442695, %v664_v3 }
 0x2f6   : > { %v1854_v22 = vpop.eup %1328  ;;  %v708_v5 = vmul.f32 1.442695, %v665_v4 }
 0x2f7   : > { %v1856_v10 = vpop.eup %1330  ;;  %1334 = vpow2.f32 %v702_v9  ;;  %v768_v36 = vadd.f32 %v1854_v22, %v1852_v29 }
 0x2f8   : > { %v1860_v23 = vpop.eup %1332  ;;  %1336 = vpow2.f32 %v704_v34 }
 0x2f9   : > { %1338 = vpow2.f32 %v714_v30  ;;  %769 = vadd.xlane.f32.xlu1 %v768_v36  ;;  %v777_v15 = vadd.f32 %v1860_v23, %v1856_v10 }
 0x2fa   : > { %1340 = vpow2.f32 %v716_v35  ;;  %v614_v37 = vpop.xlane.xlu1 %613 }
 0x2fb   : > { %v658_v40 = vsub.f32 %v1724_v63, %v614_v37  ;;  %v659_v16 = vsub.f32 %v1726_v0, %v614_v37  ;;  %778 = vadd.xlane.f32.xlu2 %v777_v15  ;;  %v660_v63 = vsub.f32 %v1728_v1, %v617_v50  ;;  %v661_v0 = vsub.f32 %v1730_v2, %v617_v50 }
 0x2fd   : > { %v1868_v41 = vpop.eup %1334  ;;  %v694_v17 = vmul.f32 1.442695, %v658_v40  ;;  %v696_v18 = vmul.f32 1.442695, %v659_v16  ;;  %v698_v54 = vmul.f32 1.442695, %v660_v63 }
 0x2fe   : > { %v1870_v45 = vpop.eup %1336  ;;  %v700_v13 = vmul.f32 1.442695, %v661_v0 }
 0x2ff   : > { %v1872_v6 = vpop.eup %1338  ;;  %1342 = vpow2.f32 %v694_v17  ;;  %v762_v11 = vadd.f32 %v1870_v45, %v1868_v41 }
 0x300   : > { %v1876_v12 = vpop.eup %1340  ;;  %1344 = vpow2.f32 %v696_v18 }
 0x301   : > { %1346 = vpow2.f32 %v706_v42  ;;  %763 = vadd.xlane.f32.xlu1 %v762_v11  ;;  %v771_v52 = vadd.f32 %v1876_v12, %v1872_v6 }
 0x302   : > { %1348 = vpow2.f32 %v708_v5  ;;  %v611_v51 = vpop.xlane.xlu1 %610 }
 0x303   : > { %772 = vadd.xlane.f32.xlu2 %v771_v52  ;;  %1350 = vpow2.f32 %v698_v54  ;;  %v656_v2 = vsub.f32 %v1720_v61, %v611_v51  ;;  %v657_v14 = vsub.f32 %v1722_v62, %v611_v51 }
 0x304   : > { %1352 = vpow2.f32 %v700_v13 }
 0x305   : > { %v1882_v53 = vpop.eup %1342  ;;  %v690_v25 = vmul.f32 1.442695, %v656_v2  ;;  %v692_v33 = vmul.f32 1.442695, %v657_v14 }
 0x306   : > { %v1884_v55 = vpop.eup %1344 }
 0x307   : > { %v1886_v57 = vpop.eup %1346  ;;  %v756_v1 = vadd.f32 %v1884_v55, %v1882_v53 }
 0x308   : > { %v1890_v58 = vpop.eup %1348 }
 0x309   : > { %757 = vadd.xlane.f32.xlu1 %v756_v1  ;;  %v765_v8 = vadd.f32 %v1890_v58, %v1886_v57  ;;  %v1898_v30 = vpop.eup %1350 }
 0x30a   : > { %v608_v7 = vpop.xlane.xlu1 %607  ;;  %v1900_v61 = vpop.eup %1352 }
 0x30b   : > { %v654_v27 = vsub.f32 %v1716_v59, %v608_v7  ;;  %v655_v31 = vsub.f32 %v1718_v60, %v608_v7  ;;  %766 = vadd.xlane.f32.xlu2 %v765_v8  ;;  %v759_v62 = vadd.f32 %v1900_v61, %v1898_v30 }
 0x30d   : > { %v686_v26 = vmul.f32 1.442695, %v654_v27  ;;  %v688_v32 = vmul.f32 1.442695, %v655_v31 }
 0x30f   : > { %1354 = vpow2.f32 %v686_v26 }
 0x310   : > { %1356 = vpow2.f32 %v688_v32 }
 0x311   : > { %1358 = vpow2.f32 %v690_v25 }
 0x312   : > { %1360 = vpow2.f32 %v692_v33 }
 0x313   : > { %760 = vadd.xlane.f32.xlu2 %v759_v62 }
 0x315   : > { %v1904_v9 = vpop.eup %1354 }
 0x316   : > { %v1906_v59 = vpop.eup %1356 }
 0x317   : > { %v1908_v60 = vpop.eup %1358  ;;  %v750_v34 = vadd.f32 %v1906_v59, %v1904_v9 }
 0x318   : > { %v1912_v35 = vpop.eup %1360 }
 0x319   : > { %751 = vadd.xlane.f32.xlu1 %v750_v34  ;;  %v753_v36 = vadd.f32 %v1912_v35, %v1908_v60 }
 0x31b   : > { %754 = vadd.xlane.f32.xlu2 %v753_v36 }
 0x33c   : > { %v788_v3 = vpop.xlane.xlu1 %787 }
 0x33d   : > { %1362 = vrcp.f32 %v788_v3 }
 0x343   : > { %v1363_v4 = vpop.eup %1362 }
 0x344   : > { %v826_v37 = vmul.f32 %v1363_v4, %v788_v3 }
 0x346   : > { %v842_v15 = vsub.f32 2.0, %v826_v37 }
 0x348   : > { %v858_v40 = vmul.f32 %v1363_v4, %v842_v15 }
 0x34a   : > { %v1917_v16 = vmul.f32 %v1794_v48, %v858_v40  ;;  %v1920_v42 = vmul.f32 %v1796_v49, %v858_v40 }
 0x34c   : > { %918 = vst [vmem:[%s1645_s6 + $0xc0] sm:$0xff] %v1917_v16  ;;  %v794_v17 = vpop.xlane.xlu2 %793 }
 0x34d   : > { %919 = vst [vmem:[%s1645_s6 + $0xc8] sm:$0xff] %v1920_v42  ;;  %1364 = vrcp.f32 %v794_v17 }
 0x353   : > { %v1365_v18 = vpop.eup %1364 }
 0x354   : > { %v828_v5 = vmul.f32 %v1365_v18, %v794_v17 }
 0x355   : > { %v797_v11 = vpop.xlane.xlu2 %796 }
 0x356   : > { %v844_v50 = vsub.f32 2.0, %v828_v5  ;;  %1366 = vrcp.f32 %v797_v11 }
 0x358   : > { %v860_v63 = vmul.f32 %v1365_v18, %v844_v50 }
 0x35a   : > { %v890_v0 = vmul.f32 %v1800_v21, %v860_v63  ;;  %v891_v48 = vmul.f32 %v1803_v28, %v860_v63 }
 0x35c   : > { %v782_v51 = vpop.xlane.xlu1 %781  ;;  %922 = vst [vmem:[%s1645_s6 + $0xe0] sm:$0xff] %v890_v0  ;;  %v1367_v49 = vpop.eup %1366 }
 0x35d   : > { %1368 = vrcp.f32 %v782_v51  ;;  %923 = vst [vmem:[%s1645_s6 + $0xe8] sm:$0xff] %v891_v48  ;;  %v829_v52 = vmul.f32 %v1367_v49, %v797_v11  ;;  %v791_v54 = vpop.xlane.xlu2 %790 }
 0x35e   : > { %1370 = vrcp.f32 %v791_v54 }
 0x35f   : > { %v845_v13 = vsub.f32 2.0, %v829_v52 }
 0x361   : > { %v861_v1 = vmul.f32 %v1367_v49, %v845_v13 }
 0x363   : > { %v1369_v2 = vpop.eup %1368  ;;  %v892_v8 = vmul.f32 %v1812_v38, %v861_v1  ;;  %v893_v21 = vmul.f32 %v1814_v39, %v861_v1 }
 0x364   : > { %v824_v14 = vmul.f32 %v1369_v2, %v782_v51  ;;  %v776_v7 = vpop.xlane.xlu1 %775  ;;  %v1371_v28 = vpop.eup %1370 }
 0x365   : > { %1372 = vrcp.f32 %v776_v7  ;;  %v827_v31 = vmul.f32 %v1371_v28, %v791_v54  ;;  %924 = vst [vmem:[%s1645_s6 + $0xf0] sm:$0xff] %v892_v8  ;;  %930 = vmatpush.xpose.msra.mxu2 %v892_v8  ;;  %953 = vmatpush.xpose.msra.mxu3 %v893_v21  ;;  %v785_v25 = vpop.xlane.xlu2 %784 }
 0x366   : > { %v840_v27 = vsub.f32 2.0, %v824_v14  ;;  %925 = vst [vmem:[%s1645_s6 + $0xf8] sm:$0xff] %v893_v21  ;;  %1374 = vrcp.f32 %v785_v25 }
 0x367   : > { %v843_v26 = vsub.f32 2.0, %v827_v31 }
 0x368   : > { %v856_v32 = vmul.f32 %v1369_v2, %v840_v27 }
 0x369   : > { %931 = vmatpush.xpose.msra.mxu2 %v890_v0  ;;  %954 = vmatpush.xpose.msra.mxu3 %v891_v48  ;;  %v859_v38 = vmul.f32 %v1371_v28, %v843_v26 }
 0x36a   : > { %v882_v39 = vmul.f32 %v1824_v46, %v856_v32  ;;  %v883_v33 = vmul.f32 %v1826_v47, %v856_v32 }
 0x36b   : > { %v1373_v62 = vpop.eup %1372  ;;  %v888_v3 = vmul.f32 %v1820_v43, %v859_v38  ;;  %v889_v4 = vmul.f32 %v1822_v44, %v859_v38 }
 0x36c   : > { %v822_v34 = vmul.f32 %v1373_v62, %v776_v7  ;;  %v770_v36 = vpop.xlane.xlu1 %769  ;;  %914 = vst [vmem:[%s1645_s6 + $0xa0] sm:$0xff] %v882_v39  ;;  %v1375_v37 = vpop.eup %1374 }
 0x36d   : > { %1376 = vrcp.f32 %v770_v36  ;;  %915 = vst [vmem:[%s1645_s6 + $0xa8] sm:$0xff] %v883_v33  ;;  %v825_v40 = vmul.f32 %v1375_v37, %v785_v25  ;;  %932 = vmatpush.xpose.msra.mxu2 %v888_v3  ;;  %955 = vmatpush.xpose.msra.mxu3 %v889_v4 }
 0x36e   : > { %v838_v15 = vsub.f32 2.0, %v822_v34  ;;  %920 = vst [vmem:[%s1645_s6 + $0xd0] sm:$0xff] %v888_v3  ;;  %v779_v46 = vpop.xlane.xlu2 %778 }
 0x36f   : > { %921 = vst [vmem:[%s1645_s6 + $0xd8] sm:$0xff] %v889_v4  ;;  %1378 = vrcp.f32 %v779_v46  ;;  %v841_v47 = vsub.f32 2.0, %v825_v40 }
 0x370   : > { %v854_v17 = vmul.f32 %v1373_v62, %v838_v15 }
 0x371   : > { %933 = vmatpush.xpose.msra.mxu2 %v1917_v16  ;;  %956 = vmatpush.xpose.msra.mxu3 %v1920_v42  ;;  %v857_v43 = vmul.f32 %v1375_v37, %v841_v47 }
 0x372   : > { %v878_v44 = vmul.f32 %v1840_v20, %v854_v17  ;;  %v879_v18 = vmul.f32 %v1842_v24, %v854_v17 }
 0x373   : > { %v1377_v5 = vpop.eup %1376  ;;  %v884_v63 = vmul.f32 %v1836_v56, %v857_v43  ;;  %v885_v0 = vmul.f32 %v1838_v19, %v857_v43 }
 0x374   : > { %v820_v50 = vmul.f32 %v1377_v5, %v770_v36  ;;  %v764_v11 = vpop.xlane.xlu1 %763  ;;  %910 = vst [vmem:[%s1645_s6 + $0x80] sm:$0xff] %v878_v44 }
 0x375   : > { %v1379_v48 = vpop.eup %1378  ;;  %1380 = vrcp.f32 %v764_v11  ;;  %911 = vst [vmem:[%s1645_s6 + $0x88] sm:$0xff] %v879_v18  ;;  %934 = vmatpush.xpose.msra.mxu2 %v884_v63  ;;  %957 = vmatpush.xpose.msra.mxu3 %v885_v0 }
 0x376   : > { %v836_v16 = vsub.f32 2.0, %v820_v50  ;;  %v823_v51 = vmul.f32 %v1379_v48, %v779_v46  ;;  %916 = vst [vmem:[%s1645_s6 + $0xb0] sm:$0xff] %v884_v63  ;;  %v773_v20 = vpop.xlane.xlu2 %772  ;;  %v928_v63 = vld [vmem:[#allocation4 + $0x18] sm:$0xff] }
 0x377   : > { %917 = vst [vmem:[%s1645_s6 + $0xb8] sm:$0xff] %v885_v0  ;;  %1382 = vrcp.f32 %v773_v20  ;;  %v929_v0 = vld [vmem:[#allocation4 + $0x8] sm:$0xff] }
 0x378   : > { %v839_v24 = vsub.f32 2.0, %v823_v51  ;;  %v852_v42 = vmul.f32 %v1377_v5, %v836_v16 }
 0x379   : > { %935 = vmatpush.xpose.msra.mxu2 %v882_v39  ;;  %958 = vmatpush.xpose.msra.mxu3 %v883_v33 }
 0x37a   : > { %v855_v56 = vmul.f32 %v1379_v48, %v839_v24  ;;  %v874_v19 = vmul.f32 %v1852_v29, %v852_v42  ;;  %v875_v49 = vmul.f32 %v1854_v22, %v852_v42 }
 0x37b   : > { %v1381_v52 = vpop.eup %1380 }
 0x37c   : > { %v818_v54 = vmul.f32 %v1381_v52, %v764_v11  ;;  %v758_v13 = vpop.xlane.xlu1 %757  ;;  %v880_v1 = vmul.f32 %v1856_v10, %v855_v56  ;;  %v881_v2 = vmul.f32 %v1860_v23, %v855_v56  ;;  %906 = vst [vmem:[%s1645_s6 + $0x60] sm:$0xff] %v874_v19 }
 0x37d   : > { %v1383_v14 = vpop.eup %1382  ;;  %1384 = vrcp.f32 %v758_v13  ;;  %907 = vst [vmem:[%s1645_s6 + $0x68] sm:$0xff] %v875_v49 }
 0x37e   : > { %v834_v7 = vsub.f32 2.0, %v818_v54  ;;  %v821_v8 = vmul.f32 %v1383_v14, %v773_v20  ;;  %912 = vst [vmem:[%s1645_s6 + $0x90] sm:$0xff] %v880_v1  ;;  %936 = vmatpush.xpose.msra.mxu2 %v880_v1  ;;  %959 = vmatpush.xpose.msra.mxu3 %v881_v2  ;;  %v767_v29 = vpop.xlane.xlu2 %766 }
 0x37f   : > { %913 = vst [vmem:[%s1645_s6 + $0x98] sm:$0xff] %v881_v2  ;;  %1386 = vrcp.f32 %v767_v29 }
 0x380   : > { %v837_v22 = vsub.f32 2.0, %v821_v8  ;;  %v850_v21 = vmul.f32 %v1381_v52, %v834_v7 }
 0x382   : > { %937 = vmatpush.xpose.msra.mxu2 %v878_v44  ;;  %960 = vmatpush.xpose.msra.mxu3 %v879_v18  ;;  %v853_v10 = vmul.f32 %v1383_v14, %v837_v22  ;;  %v870_v23 = vmul.f32 %v1868_v41, %v850_v21  ;;  %v871_v28 = vmul.f32 %v1870_v45, %v850_v21 }
 0x383   : > { %v1385_v27 = vpop.eup %1384 }
 0x384   : > { %v816_v31 = vmul.f32 %v1385_v27, %v758_v13  ;;  %v876_v25 = vmul.f32 %v1872_v6, %v853_v10  ;;  %v877_v26 = vmul.f32 %v1876_v12, %v853_v10  ;;  %902 = vst [vmem:[%s1645_s6 + $0x40] sm:$0xff] %v870_v23 }
 0x385   : > { %v1387_v32 = vpop.eup %1386  ;;  %903 = vst [vmem:[%s1645_s6 + $0x48] sm:$0xff] %v871_v28 }
 0x386   : > { %v832_v38 = vsub.f32 2.0, %v816_v31  ;;  %v819_v39 = vmul.f32 %v1387_v32, %v767_v29  ;;  %908 = vst [vmem:[%s1645_s6 + $0x70] sm:$0xff] %v876_v25  ;;  %938 = vmatpush.xpose.msra.mxu2 %v876_v25  ;;  %961 = vmatpush.xpose.msra.mxu3 %v877_v26  ;;  %v761_v33 = vpop.xlane.xlu2 %760 }
 0x387   : > { %909 = vst [vmem:[%s1645_s6 + $0x78] sm:$0xff] %v877_v26  ;;  %1388 = vrcp.f32 %v761_v33 }
 0x388   : > { %v835_v41 = vsub.f32 2.0, %v819_v39  ;;  %v848_v45 = vmul.f32 %v1385_v27, %v832_v38 }
 0x38a   : > { %939 = vmatpush.xpose.msra.mxu2 %v874_v19  ;;  %962 = vmatpush.xpose.msra.mxu3 %v875_v49  ;;  %v851_v12 = vmul.f32 %v1387_v32, %v835_v41  ;;  %v866_v62 = vmul.f32 %v1882_v53, %v848_v45  ;;  %v867_v34 = vmul.f32 %v1884_v55, %v848_v45 }
 0x38c   : > { %v752_v6 = vpop.xlane.xlu1 %751  ;;  %v872_v36 = vmul.f32 %v1886_v57, %v851_v12  ;;  %v873_v3 = vmul.f32 %v1890_v58, %v851_v12  ;;  %898 = vst [vmem:[%s1645_s6 + $0x20] sm:$0xff] %v866_v62 }
 0x38d   : > { %1390 = vrcp.f32 %v752_v6  ;;  %v1389_v4 = vpop.eup %1388  ;;  %899 = vst [vmem:[%s1645_s6 + $0x28] sm:$0xff] %v867_v34 }
 0x38e   : > { %v817_v37 = vmul.f32 %v1389_v4, %v761_v33  ;;  %904 = vst [vmem:[%s1645_s6 + $0x50] sm:$0xff] %v872_v36  ;;  %940 = vmatpush.xpose.msra.mxu2 %v872_v36  ;;  %963 = vmatpush.xpose.msra.mxu3 %v873_v3  ;;  %v755_v15 = vpop.xlane.xlu2 %754 }
 0x38f   : > { %905 = vst [vmem:[%s1645_s6 + $0x58] sm:$0xff] %v873_v3  ;;  %1392 = vrcp.f32 %v755_v15 }
 0x390   : > { %v833_v53 = vsub.f32 2.0, %v817_v37 }
 0x392   : > { %941 = vmatpush.xpose.msra.mxu2 %v870_v23  ;;  %964 = vmatpush.xpose.msra.mxu3 %v871_v28  ;;  %v849_v57 = vmul.f32 %v1389_v4, %v833_v53 }
 0x393   : > { %v1391_v40 = vpop.eup %1390 }
 0x394   : > { %v814_v55 = vmul.f32 %v1391_v40, %v752_v6  ;;  %v868_v58 = vmul.f32 %v1898_v30, %v849_v57  ;;  %v869_v47 = vmul.f32 %v1900_v61, %v849_v57 }
 0x395   : > { %v1393_v17 = vpop.eup %1392 }
 0x396   : > { %v830_v46 = vsub.f32 2.0, %v814_v55  ;;  %v815_v44 = vmul.f32 %v1393_v17, %v755_v15  ;;  %900 = vst [vmem:[%s1645_s6 + $0x30] sm:$0xff] %v868_v58  ;;  %942 = vmatpush.xpose.msra.mxu2 %v868_v58  ;;  %965 = vmatpush.xpose.msra.mxu3 %v869_v47 }
 0x397   : > { %901 = vst [vmem:[%s1645_s6 + $0x38] sm:$0xff] %v869_v47 }
 0x398   : > { %v846_v43 = vmul.f32 %v1391_v40, %v830_v46  ;;  %v831_v18 = vsub.f32 2.0, %v815_v44 }
 0x39a   : > { %v862_v5 = vmul.f32 %v1904_v9, %v846_v43  ;;  %v863_v50 = vmul.f32 %v1906_v59, %v846_v43  ;;  %v847_v11 = vmul.f32 %v1393_v17, %v831_v18  ;;  %943 = vmatpush.xpose.msra.mxu2 %v866_v62  ;;  %966 = vmatpush.xpose.msra.mxu3 %v867_v34  ;;  %v926_v9 = vld [vmem:[#allocation4 + $0x10] sm:$0xff]  ;;  %v927_v59 = vld [vmem:[#allocation4] sm:$0xff] }
 0x39c   : > { %894 = vst [vmem:[%s1645_s6] sm:$0xff] %v862_v5  ;;  %v864_v30 = vmul.f32 %v1908_v60, %v847_v11  ;;  %v865_v61 = vmul.f32 %v1912_v35, %v847_v11 }
 0x39d   : > { %895 = vst [vmem:[%s1645_s6 + $0x8] sm:$0xff] %v863_v50 }
 0x39e   : > { %896 = vst [vmem:[%s1645_s6 + $0x10] sm:$0xff] %v864_v30  ;;  %944 = vmatpush.xpose.msra.mxu2 %v864_v30  ;;  %967 = vmatpush.xpose.msra.mxu3 %v865_v61 }
 0x39f   : > { %897 = vst [vmem:[%s1645_s6 + $0x18] sm:$0xff] %v865_v61 }
 0x3a2   : > { %945 = vmatpush.xpose.msra.mxu2 %v862_v5  ;;  %968 = vmatpush.xpose.msra.mxu3 %v863_v50 }
 0x3a5   : > { %946 = vmatmul.f32.vlgmr.msra.gmra.mxu2 %v926_v9  ;;  %969 = vmatmul.f32.vlgmr.msra.gmra.mxu3 %v927_v59 }
 0x3ad   : > { %949 = vmatmul.f32.gmra.mxu2 %v928_v63  ;;  %972 = vmatmul.f32.gmra.mxu3 %v929_v0 }
 0x3ae   : > { %1421 = shalt.err (!%p1418_p7)
}
 0x3af   : > { %s1523_s6 = smov 256   ;;  %s1524_s10 = smov 16  }
 0x3b0   : > { %1215 = dma.vmem_to_hbm [thread:$0]  (%p1611_p3), %s1028_s17, 4096, %s1030_s1, %s994_s2, %s1523_s6, %s1523_s6, %s1524_s10  }
 0x3b1   : > { %s976_s26 = sld [smem:[#allocation5]]  ;;  %s1197_s29 = sshll.u32 %s1681_s15, 3 }
 0x3b2   : > { %s1200_s11 = sshll.u32 %s1508_s24, 2  ;;  %s978_s3 = scalar_lea.vmem %s1641_s0, %s1197_s29 }
 0x3b3   : > { %s1004_s30 = sadd.s32 %s1504_s23, %s1200_s11  ;;  %v979_v51 = vld [vmem:[%s978_s3] sm:$0xff]  ;;  %s1007_s2 = sshll.u32 %s1643_s28, 4  ;;  %v980_v49 = vld [vmem:[%s978_s3 + $0x10] sm:$0xff]  ;;  %s1008_s2 = int_to_ptr.vmem [resolvable:$true] %s1007_s2 }
 0x3b4   : > { %s1201_s14 = sshll.u32 %s1004_s30, 3  ;;  %s989_s23 = scalar_lea.sflag [#allocation7], %s1632_s13 }
 0x3b5   : > { %s1006_s1 = scalar_lea.hbm %s2061_s4, %s1201_s14  ;;  %s1442_s9 = scalar_lea.hbm %s2061_s4, 64 }
 0x3b6   : > { %s1009_s24 = sshll.u32 %s1006_s1, 4  ;;  %s1010_s24 = int_to_ptr.hbm [resolvable:$true] %s1009_s24 }
 0x3b7   : > { %v981_v48 = vstv %s976_s26  ;;  %s1436_s0 = sshra.s32 %s1010_s24, 4  ;;  %s1437_s0 = int_to_ptr.hbm [resolvable:$true] %s1436_s0 }
 0x3b8   : > { %s1438_s15 = scalar_lea.hbm %s1437_s0, 16  ;;  %p1443_p12 = scmp.lt.s32.totalorder %s1437_s0, %s2061_s4 }
 0x3b9   : > { %p1439_p9 = scmp.ne.s32.totalorder %s1437_s0, %s1438_s15  ;;  %p1444_p13 = scmp.lt.s32.totalorder %s1442_s9, %s1438_s15 }
 0x3bb   : > { %p1440_p10 = pnand %p1439_p9, %p1611_p3  ;;  %p1445_p0 = por %p1444_p13, %p1443_p12 }
 0x3bd   : > { %p1441_p11 = pneg %p1440_p10 }
 0x3bf   : > { %p1446_p1 = pnand %p1445_p0, %p1441_p11 }
 0x428   : > { %v947_v60 = vpop.f32.mrf.mxu2  ;;  %v970_v35 = vpop.f32.mrf.mxu3 }
 0x429   : > { %v971_v16 = vadd.f32 %v970_v35, %v947_v60 }
 0x42b   : > { %v982_v20 = vmul.f32 %v981_v48, %v971_v16 }
 0x42d   : > { %v984_v24 = vadd.f32 %v982_v20, %v979_v51 }
 0x42f   : > { %986 = vst [vmem:[%s1643_s28] sm:$0xff] %v984_v24 }
 0x430   : > { %v950_v42 = vpop.f32.mrf.mxu2  ;;  %v973_v56 = vpop.f32.mrf.mxu3 }
 0x431   : > { %v974_v19 = vadd.f32 %v973_v56, %v950_v42 }
 0x433   : > { %v983_v52 = vmul.f32 %v981_v48, %v974_v19 }
 0x435   : > { %v985_v54 = vadd.f32 %v983_v52, %v980_v49 }
 0x437   : > { %987 = vst [vmem:[%s1643_s28 + $0x8] sm:$0xff] %v985_v54 }
 0x438   : > { %1449 = shalt.err (!%p1446_p1)
}
 0x439   : > { %s1525_s13 = smov 128   ;;  %s1526_s28 = smov 8  }
 0x43a   : > { %1214 = dma.vmem_to_hbm [thread:$0]  (%p1611_p3), %s1008_s2, 256, %s1010_s24, %s989_s23, %s1525_s13, %s1523_s6, %s1526_s28  }
 0x43b PF: > { %p1225_p2 = scmp.ge.s32.totalorder %s1520_s27, 2  ;;  %s1044_s29 = sand.u32 1, %s1492_s20  }
 0x43c   : > { %s1045_s11 = scalar_lea.sflag [#allocation7], %s1044_s29 }
 0x43d   : > { %p1219_p4 = pnand %p1225_p2, %p1620_p8 }
 0x43f   : > { %p1220_p5 = pneg %p1219_p4 }
 0x441   : > { %1483 = dma.done.wait (%p1220_p5), %s1045_s11, 256  }
 0x442   : > { %1485 = vsyncadd (%p1220_p5), %s1045_s11, 4294967040  ;;  %s1055_s3 = scalar_lea.sflag [#allocation9], %s1044_s29 }
 0x443   : > { %1487 = dma.done.wait (%p1220_p5), %s1055_s3, 4096  }
 0x444   : > { %1489 = vsyncadd (%p1220_p5), %s1055_s3, 4294963200  ;;  %s23_s27 = sadd.s32 1, %s1520_s27   ;;  %s2077_s24 = sld [smem:[#allocation12_spill]] }
 0x445   : > { %p20_p6 = scmp.ge.s32.totalorder %s23_s27, 6   ;;  %s2078_s7 = sld [smem:[#allocation13_spill]] }
 0x446   : > { %s2079_s26 = sld [smem:[#allocation14_spill]]  ;;  %s2080_s20 = smov %s1496_s21 }
 0x447   : > { %s2081_s21 = smov %s1500_s22  ;;  %s2082_s22 = smov %s1629_s12 }
 0x448   : > { %s2083_s23 = smov %s1512_s25  ;;  %22 = sbr.rel (!%p20_p6) target bundleno = 12 (0xc), region = 95 }
 0x44b   : > { %s2084_s25 = smov %s2078_s7 }
 0x44d   :  { %1061 = vsyncpa [#allocation7], 1 }
 0x44e   :  { %1063 = vsyncpa [#allocation7 + $0x1], 1 }
 0x44f   :  { %1064 = vsyncpa [#allocation9], 1 }
 0x450   :  { %1066 = vsyncpa [#allocation9 + $0x1], 1 }

</bundles_post_ra>
